<compile_context>
chip_gen: v6e
topology: v6e:2x2x1
jax: 0.10.0
libtpu: 0.0.40
codegen_flags: <defaults>
</compile_context>

<pallas_src>
import jax
import jax.numpy as jnp
from jax.experimental import pallas as pl
from jax.experimental.pallas import tpu as pltpu

IN_FEATURES = 3
OUT_FEATURES = 8

_LANE = 128
_PACK = _LANE // OUT_FEATURES      # 16 output rows packed per 128-lane row
_ROW_ALIGN = _PACK * 8             # 128: keeps packed-row count a multiple of 8
_TMP_MAX = 4096                    # max packed rows per grid step
                                   #   (= 65536 x-rows, ~8.4 MiB double-buffered)


def _round_up(x, m):
    return ((x + m - 1) // m) * m


def _linear_sub_relu_kernel(xp_ref, w_ref, b_ref, o_ref):
    # xp_ref: (tm, 48)  -- 16 input rows (3 feats each) per lane-dense row
    # w_ref : (48, 128) -- block-diag(W.T x 16), resident in VMEM
    # b_ref : (1, 128)  -- tiled (bias - 1.5), resident in VMEM
    # o_ref : (tm, 128) -- 16 output rows (8 feats each) per lane-dense row
    y = jnp.dot(xp_ref[...], w_ref[...], preferred_element_type=jnp.float32)
    o_ref[...] = jnp.maximum(y + b_ref[...], 0.0).astype(o_ref.dtype)


def linear_sub_relu(x, weight, bias):
    """relu(x @ weight.T + bias - 1.5).

    x: (M, 3) f32, weight: (8, 3) f32 (PyTorch layout), bias: (8,) f32.
    Returns (M, 8) f32.
    """
    M, K = x.shape
    N = weight.shape[0]

    # Row-pack so both the input read and the output write are lane-dense and
    # already in the caller's row-major order (no transposes anywhere).
    m_aligned = _round_up(M, _ROW_ALIGN)
    if m_aligned != M:
        # Fallback for unaligned M only: one small pad copy + output slice.
        x = jnp.pad(x, ((0, m_aligned - M), (0, 0)))
    R = m_aligned // _PACK                        # packed rows, multiple of 8
    xp = x.reshape(R, _PACK * K)                  # free row-major reshape

    # Block-diagonal weight so packed rows go straight through one matmul:
    # out_packed[r, p*8+n] = sum_k x[16r+p, k] * W[n, k]
    w_block = jnp.kron(jnp.eye(_PACK, dtype=weight.dtype), weight.T)  # (48, 128)
    b_fold = jnp.tile(bias - 1.5, _PACK).reshape(1, _PACK * N)        # (1, 128)

    # Tile: as big as VMEM comfortably allows, but >= 2 grid steps when
    # possible so v7x's two TensorCores both get work.
    tm = min(_TMP_MAX, _round_up(pl.cdiv(R, 2), 8), R)
    grid = (pl.cdiv(R, tm),)

    bytes_accessed = (xp.size + R * _LANE + w_block.size + b_fold.size) * 4
    cost = pl.CostEstimate(
        flops=2 * R * (_PACK * K) * _LANE,
        transcendentals=0,
        bytes_accessed=bytes_accessed,
    )

    out_packed = pl.pallas_call(
        _linear_sub_relu_kernel,
        out_shape=jax.ShapeDtypeStruct((R, _PACK * N), jnp.float32),
        grid=grid,
        in_specs=[
            # x tile: lane-dense packed rows, tiled along the grid.
            pl.BlockSpec((tm, _PACK * K), lambda i: (i, 0)),
            # weight: constant block index -> resident in VMEM.
            pl.BlockSpec((_PACK * K, _PACK * N), lambda i: (0, 0)),
            # folded bias: constant block index -> resident.
            pl.BlockSpec((1, _PACK * N), lambda i: (0, 0)),
        ],
        out_specs=pl.BlockSpec((tm, _PACK * N), lambda i: (i, 0)),
        compiler_params=pltpu.CompilerParams(
            # Independent tiles: shard across the 2 TensorCores on v7x,
            # harmless on v5e/v6e.
            dimension_semantics=("parallel",),
            vmem_limit_bytes=32 * 1024 * 1024,
        ),
        cost_estimate=cost,
    )(xp, w_block, b_fold)

    out = out_packed.reshape(m_aligned, N)        # free row-major reshape
    if m_aligned != M:
        out = out[:M]
    return out


def reference(x, weight, bias):
    return jnp.maximum(x @ weight.T + bias - 1.5, 0.0)


if __name__ == "__main__":
    key = jax.random.PRNGKey(0)
    kx, kw, kb = jax.random.split(key, 3)

    # Deterministic parameter init (matches PyTorch Linear init scheme:
    # uniform(-1/sqrt(fan_in), 1/sqrt(fan_in))).
    bound = 1.0 / (IN_FEATURES ** 0.5)
    weight = jax.random.uniform(
        kw, (OUT_FEATURES, IN_FEATURES), jnp.float32, -bound, bound)
    bias = jax.random.uniform(
        kb, (OUT_FEATURES,), jnp.float32, -bound, bound)

    # Small example input: batch of 8 rows, 3 features.
    x = jax.random.normal(kx, (8, IN_FEATURES), jnp.float32)

    fn = jax.jit(linear_sub_relu)
    out = jax.block_until_ready(fn(x, weight, bias))

    ref = reference(x, weight, bias)
    assert out.shape == (8, OUT_FEATURES)
    assert jnp.allclose(out, ref, atol=1e-5, rtol=1e-5)

    print("KERNEL_OK")
</pallas_src>

<mosaic_0001>
module attributes {stable_mosaic.version = 11 : i64} {
  func.func @_linear_sub_relu_kernel(%arg0: i32, %arg1: memref<8x48xf32, #tpu.memory_space<vmem>>, %arg2: memref<48x128xf32, #tpu.memory_space<vmem>>, %arg3: memref<1x128xf32, #tpu.memory_space<vmem>>, %arg4: memref<8x128xf32, #tpu.memory_space<vmem>>) attributes {dimension_semantics = [#tpu.dimension_semantics<parallel>], iteration_bounds = array<i64: 1>, scalar_prefetch = 0 : i64, scratch_operands = 0 : i64, tpu.core_type = #tpu.core_type<tc>, window_params = [{transform_indices = @transform_0, window_bounds = array<i64: 8, 48>}, {pipeline_mode = #tpu.pipeline_mode<synchronous>, transform_indices = @transform_1, window_bounds = array<i64: 48, 128>}, {pipeline_mode = #tpu.pipeline_mode<synchronous>, transform_indices = @transform_2, window_bounds = array<i64: 1, 128>}, {transform_indices = @transform_3, window_bounds = array<i64: 8, 128>}]} {
    %c0 = arith.constant 0 : index
    %c0_0 = arith.constant 0 : index
    %0 = vector.load %arg1[%c0, %c0_0] : memref<8x48xf32, #tpu.memory_space<vmem>>, vector<8x48xf32>
    %c0_1 = arith.constant 0 : index
    %c0_2 = arith.constant 0 : index
    %1 = vector.load %arg2[%c0_1, %c0_2] : memref<48x128xf32, #tpu.memory_space<vmem>>, vector<48x128xf32>
    %cst = arith.constant dense<0.000000e+00> : vector<8x128xf32>
    %2 = tpu.matmul %0, %1, %cst {dimension_numbers = #tpu.dot_dimension_numbers<[1], [0], [0], [1], [0, 0, 1, 1], [], []>} : vector<8x48xf32>, vector<48x128xf32>, vector<8x128xf32> -> vector<8x128xf32>
    %c0_3 = arith.constant 0 : index
    %c0_4 = arith.constant 0 : index
    %3 = vector.load %arg3[%c0_3, %c0_4] : memref<1x128xf32, #tpu.memory_space<vmem>>, vector<1x128xf32>
    %4 = vector.broadcast %3 : vector<1x128xf32> to vector<8x128xf32>
    %5 = arith.addf %2, %4 : vector<8x128xf32>
    %cst_5 = arith.constant 0.000000e+00 : f32
    %6 = vector.broadcast %cst_5 : f32 to vector<8x128xf32>
    %7 = arith.maximumf %5, %6 : vector<8x128xf32>
    %c0_6 = arith.constant 0 : index
    %c0_7 = arith.constant 0 : index
    %8 = vector.load %arg4[%c0_6, %c0_7] : memref<8x128xf32, #tpu.memory_space<vmem>>, vector<8x128xf32>
    tpu.vector_store %arg4[%c0_6, %c0_7], %7 {strides = array<i32>} : memref<8x128xf32, #tpu.memory_space<vmem>>, vector<8x128xf32>,
    return
  }
  func.func @transform_0(%arg0: i32) -> (i32, i32) {
    %c0_i32 = arith.constant 0 : i32
    %c0_i32_0 = arith.constant 0 : i32
    return %arg0, %c0_i32 : i32, i32
  }
  func.func @transform_1(%arg0: i32) -> (i32, i32) {
    %c0_i32 = arith.constant 0 : i32
    %c0_i32_0 = arith.constant 0 : i32
    %c0_i32_1 = arith.constant 0 : i32
    return %c0_i32, %c0_i32_0 : i32, i32
  }
  func.func @transform_2(%arg0: i32) -> (i32, i32) {
    %c0_i32 = arith.constant 0 : i32
    %c0_i32_0 = arith.constant 0 : i32
    %c0_i32_1 = arith.constant 0 : i32
    return %c0_i32, %c0_i32_0 : i32, i32
  }
  func.func @transform_3(%arg0: i32) -> (i32, i32) {
    %c0_i32 = arith.constant 0 : i32
    %c0_i32_0 = arith.constant 0 : i32
    return %arg0, %c0_i32 : i32, i32
  }
}

</mosaic_0001>

<bundles_post_ra>
// kernel: tile.8
= control target key start
LH: loop header
LB: loop body
LE: loop exit
PB: predicated region body
PF: predicated region fallthrough
CT: control target
= control target key end

     0   :  { %s28_s0 = inlined_call_operand.vmem [shape: f32[8], index: 0, kind: input, shape index: {}]   ;;  %s29_s1 = inlined_call_operand.vmem [shape: f32[16,8], index: 1, kind: output, shape index: {}]  }
   0x1   :  { %v4_v0 = vld [vmem:[%s28_s0] ss:$0 sm:$0xff] }
   0x2   :  { %5 = vst [vmem:[%s29_s1] sm:$0xff] %v4_v0  ;;  %8 = vst [vmem:[%s29_s1 + $0x8] sm:$0xff] %v4_v0 }

// kernel: tile.9
= control target key start
LH: loop header
LB: loop body
LE: loop exit
PB: predicated region body
PF: predicated region fallthrough
CT: control target
= control target key end

     0   :  { %s133_s10 = smov 120   ;;  %s134_s11 = smov 104   ;;  %vm3_vm0 = vcmask 64512   ;;  %vm9_vm1 = vcmask 1048512   ;;  %vm15_vm2 = vcmask 982912   ;;  %vm21_vm3 = vcmask 917312   ;;  %s209_s0 = inlined_call_operand.vmem [shape: f32[16,8], index: 0, kind: input, shape index: {}]   ;;  %s210_s1 = inlined_call_operand.vmem [shape: f32[1,128], index: 1, kind: output, shape index: {}]  }
   0x1   :  { %v103_v0 = vld [vmem:[%s209_s0 + $0xf] sm:$0x1]   ;;  %v105_v1 = vld [vmem:[%s209_s0 + $0xd] sm:$0x1]   ;;  %v104_v2 = vld [vmem:[%s209_s0 + $0xe] sm:$0x1]  }
   0x2   :  { %7 = vrot.lane.b32.xlu0 %v103_v0, %s133_s10  ;;  %19 = vrot.lane.b32.xlu1 %v105_v1, %s134_s11  ;;  %v106_v3 = vld [vmem:[%s209_s0 + $0xc] sm:$0x1]   ;;  %s135_s16 = smov 112   ;;  %s136_s17 = smov 96   ;;  %v107_v4 = vld [vmem:[%s209_s0 + $0xb] sm:$0x1]  }
   0x3   :  { %v108_v5 = vld [vmem:[%s209_s0 + $0xa] sm:$0x1]   ;;  %v2_v6 = vld [vmem:[%s209_s0] sm:$0x1]   ;;  %s137_s24 = smov 88   ;;  %s138_s25 = smov 80  }
   0x4   :  { %4 = vst.msk [vmem:[#allocation0] sm:$0x1] %vm3_vm0, %v2_v6   ;;  %v109_v7 = vld [vmem:[%s209_s0 + $0x9] sm:$0x1]   ;;  %v110_v8 = vld [vmem:[%s209_s0 + $0x8] sm:$0x1]  }
   0x5   :  { %s139_s30 = smov 72   ;;  %s140_s2 = smov 64   ;;  %v111_v9 = vld [vmem:[%s209_s0 + $0x7] sm:$0x1]   ;;  %v112_v10 = vld [vmem:[%s209_s0 + $0x6] sm:$0x1]  }
   0x6   :  { %13 = vrot.lane.b32.xlu0 %v104_v2, %s135_s16  ;;  %25 = vrot.lane.b32.xlu1 %v106_v3, %s136_s17  ;;  %s141_s7 = smov 56   ;;  %s142_s8 = smov 48   ;;  %v113_v11 = vld [vmem:[%s209_s0 + $0x5] sm:$0x1]   ;;  %v114_v12 = vld [vmem:[%s209_s0 + $0x4] sm:$0x1]  }
   0x7   :  { %s143_s13 = smov 40   ;;  %s144_s14 = smov 32   ;;  %v115_v13 = vld [vmem:[%s209_s0 + $0x3] sm:$0x1]   ;;  %v116_v14 = vld [vmem:[%s209_s0 + $0x2] sm:$0x1]  }
   0x8   :  { %s145_s19 = smov 24   ;;  %s146_s20 = smov 16   ;;  %v117_v15 = vld [vmem:[%s209_s0 + $0x1] sm:$0x1]   ;;  %vm27_vm4 = vcmask 851712   ;;  %vm33_vm5 = vcmask 786112  }
   0x9   :  { %s147_s0 = smov 8   ;;  %vm39_vm6 = vcmask 720512   ;;  %vm45_vm7 = vcmask 654912   ;;  %vm51_vm8 = vcmask 589312   ;;  %vm57_vm9 = vcmask 523712  }
   0xa   :  { %31 = vrot.lane.b32.xlu0 %v107_v4, %s137_s24  ;;  %37 = vrot.lane.b32.xlu1 %v108_v5, %s138_s25  ;;  %vm63_vm10 = vcmask 458112   ;;  %vm69_vm11 = vcmask 392512   ;;  %vm75_vm12 = vcmask 326912   ;;  %vm81_vm13 = vcmask 261312  }
   0xb   :  { %vm87_vm14 = vcmask 195712   ;;  %vm93_vm15 = vcmask 130112  }
   0xe   :  { %43 = vrot.lane.b32.xlu0 %v109_v7, %s139_s30  ;;  %49 = vrot.lane.b32.xlu1 %v110_v8, %s140_s2 }
  0x12   :  { %55 = vrot.lane.b32.xlu0 %v111_v9, %s141_s7  ;;  %61 = vrot.lane.b32.xlu1 %v112_v10, %s142_s8 }
  0x16   :  { %67 = vrot.lane.b32.xlu0 %v113_v11, %s143_s13  ;;  %73 = vrot.lane.b32.xlu1 %v114_v12, %s144_s14 }
  0x1a   :  { %79 = vrot.lane.b32.xlu0 %v115_v13, %s145_s19  ;;  %85 = vrot.lane.b32.xlu1 %v116_v14, %s146_s20 }
  0x1e   :  { %91 = vrot.lane.b32.xlu0 %v117_v15, %s147_s0 }
  0x74   :  { %v8_v16 = vpop.permute.xlu0 %7   ;;  %v20_v17 = vpop.permute.xlu1 %19  }
  0x75   :  { %10 = vst.msk [vmem:[#allocation0] sm:$0x1] %vm9_vm1, %v8_v16  }
  0x78   :  { %v14_v18 = vpop.permute.xlu0 %13   ;;  %v26_v19 = vpop.permute.xlu1 %25  }
  0x79   :  { %16 = vst.msk [vmem:[#allocation0] sm:$0x1] %vm15_vm2, %v14_v18  }
  0x7a   :  { %22 = vst.msk [vmem:[#allocation0] sm:$0x1] %vm21_vm3, %v20_v17  }
  0x7b   :  { %28 = vst.msk [vmem:[#allocation0] sm:$0x1] %vm27_vm4, %v26_v19  }
  0x7c   :  { %v32_v20 = vpop.permute.xlu0 %31   ;;  %v38_v21 = vpop.permute.xlu1 %37  }
  0x7d   :  { %34 = vst.msk [vmem:[#allocation0] sm:$0x1] %vm33_vm5, %v32_v20  }
  0x7e   :  { %40 = vst.msk [vmem:[#allocation0] sm:$0x1] %vm39_vm6, %v38_v21  }
  0x80   :  { %v44_v22 = vpop.permute.xlu0 %43   ;;  %v50_v23 = vpop.permute.xlu1 %49  }
  0x81   :  { %46 = vst.msk [vmem:[#allocation0] sm:$0x1] %vm45_vm7, %v44_v22  }
  0x82   :  { %52 = vst.msk [vmem:[#allocation0] sm:$0x1] %vm51_vm8, %v50_v23  }
  0x84   :  { %v56_v24 = vpop.permute.xlu0 %55   ;;  %v62_v25 = vpop.permute.xlu1 %61  }
  0x85   :  { %58 = vst.msk [vmem:[#allocation0] sm:$0x1] %vm57_vm9, %v56_v24  }
  0x86   :  { %64 = vst.msk [vmem:[#allocation0] sm:$0x1] %vm63_vm10, %v62_v25  }
  0x88   :  { %v68_v26 = vpop.permute.xlu0 %67   ;;  %v74_v27 = vpop.permute.xlu1 %73  }
  0x89   :  { %70 = vst.msk [vmem:[#allocation0] sm:$0x1] %vm69_vm11, %v68_v26  }
  0x8a   :  { %76 = vst.msk [vmem:[#allocation0] sm:$0x1] %vm75_vm12, %v74_v27  }
  0x8c   :  { %v80_v28 = vpop.permute.xlu0 %79   ;;  %v86_v29 = vpop.permute.xlu1 %85  }
  0x8d   :  { %82 = vst.msk [vmem:[#allocation0] sm:$0x1] %vm81_vm13, %v80_v28  }
  0x8e   :  { %88 = vst.msk [vmem:[#allocation0] sm:$0x1] %vm87_vm14, %v86_v29  }
  0x90   :  { %v92_v30 = vpop.permute.xlu0 %91  }
  0x91   :  { %94 = vst.msk [vmem:[#allocation0] sm:$0x1] %vm93_vm15, %v92_v30  }
  0x98   :  { %v99_v31 = vld [vmem:[#allocation0] sm:$0x1] }
  0x99   :  { %102 = vst [vmem:[%s210_s1] sm:$0x1] %v99_v31 }

// kernel: linear_sub_relu.1
= control target key start
LH: loop header
LB: loop body
LE: loop exit
PB: predicated region body
PF: predicated region fallthrough
CT: control target
= control target key end

     0   :  { %v134_v0 = vmov 0.0   ;;  %vm135_vm0 = vmmov 0   ;;  %vm28_vm1 = vcmask 392192   ;;  %s183_s1 = inlined_call_operand.vmem [shape: f32[48,128], index: 1, kind: input, shape index: {}]   ;;  %s184_s0 = inlined_call_operand.vmem [shape: f32[8,48], index: 0, kind: input, shape index: {}]   ;;  %s185_s2 = inlined_call_operand.vmem [shape: f32[1,128], index: 2, kind: input, shape index: {}]   ;;  %s186_s3 = inlined_call_operand.vmem [shape: f32[8,128], index: 3, kind: output, shape index: {}]  }
   0x1   :  { %117 = vmatprep.subr.mxu0 %v134_v0  ;;  %v20_v1 = vld [vmem:[%s183_s1 + $0x28] sm:$0xff]  ;;  %v19_v2 = vld [vmem:[%s183_s1 + $0x20] sm:$0xff]  ;;  %129 = vmatprep.mubr.msk.f32.mxu0 %vm135_vm0, %v134_v0  ;;  %v18_v3 = vld [vmem:[%s183_s1 + $0x18] sm:$0xff] }
   0x2   :  { %118 = vmatpush3.msra.mxu0 %v20_v1  ;;  %v17_v4 = vld [vmem:[%s183_s1 + $0x10] sm:$0xff]  ;;  %v16_v5 = vld [vmem:[%s183_s1 + $0x8] sm:$0xff]  ;;  %v15_v6 = vld [vmem:[%s183_s1] sm:$0xff] }
   0x3   :  { %119 = vmatprep.subr.mxu0 %v134_v0  ;;  %v14_v7 = vld [vmem:[%s184_s0] sm:$0xff] }
   0x4   :  { %120 = vmatpush3.msra.mxu0 %v19_v2  ;;  %v108_v8 = vld [vmem:[%s185_s2] ss:$0 sm:$0xff] }
   0x5   :  { %121 = vmatprep.subr.mxu0 %v134_v0 }
   0x6   :  { %122 = vmatpush3.msra.mxu0 %v18_v3 }
   0x7   :  { %123 = vmatprep.subr.mxu0 %v134_v0 }
   0x8   :  { %124 = vmatpush3.msra.mxu0 %v17_v4 }
   0x9   :  { %125 = vmatprep.subr.mxu0 %v134_v0 }
   0xa   :  { %126 = vmatpush3.msra.mxu0 %v16_v5 }
   0xb   :  { %127 = vmatprep.subr.mxu0 %v134_v0 }
   0xc   :  { %128 = vmatpush3.msra.mxu0 %v15_v6 }
   0xd   :  { %130 = vmatmul.mubr.msk.f32.vlgmr.msra.gmra.mxu0 %vm28_vm1, %v14_v7 }
  0xcd   :  { %v98_v9 = vpop.f32.mrf.mxu0 }
  0xce   :  { %v99_v10 = vadd.f32 %v108_v8, %v98_v9 }
  0xcf   :  { %v131_v11 = vpop.f32.mrf.mxu0 }
  0xd0   :  { %v102_v12 = vmax.f32 %v99_v10, 0.0 }
  0xd2   :  { %103 = vst [vmem:[%s186_s3] sm:$0xff] %v102_v12 }

</bundles_post_ra>
